<compile_context>
chip_gen: v7x
topology: tpu7x:2x2x1
jax: 0.10.0
libtpu: 0.0.40
codegen_flags: <defaults>
</compile_context>

<pallas_src>
import functools

import jax
import jax.numpy as jnp
from jax.experimental import pallas as pl
from jax.experimental.pallas import tpu as pltpu


# ---------------------------------------------------------------------------
# small helpers
# ---------------------------------------------------------------------------
def _largest_divisor_leq(n, cap):
    cap = max(1, min(n, cap))
    while n % cap:
        cap -= 1
    return cap


def _is_v7x():
    try:
        return "v7" in jax.devices()[0].device_kind.lower()
    except Exception:
        return False


def _pick_batch_tile(bs, cap):
    """Largest batch tile <= cap whose output blocks stay sublane-dense:
    either the whole batch or a multiple-of-8 divisor of bs."""
    cap = max(1, min(bs, cap))
    if cap >= bs:
        return bs
    t = cap - (cap % 8)
    while t >= 8:
        if bs % t == 0:
            return t
        t -= 8
    return _largest_divisor_leq(bs, cap)


def _pinned(shape):
    nd = len(shape)
    return pl.BlockSpec(shape, lambda b: (0,) * nd)


def _draw_eps(noise_seed, shape, perturb_var):
    """eps = randn * perturb_var (matches torch.randn_like(std) * perturb_var)."""
    key = jax.random.PRNGKey(noise_seed)
    return jax.random.normal(key, shape, jnp.float32) * perturb_var


# ---------------------------------------------------------------------------
# fused Pallas kernel: backbone stand-in (GAP + Linear) + composed fc_mu/fc_std
# ---------------------------------------------------------------------------
def encoder_kernel(x_ref, wbb_ref, bbb_ref, wmu_ref, wstd_ref,
                   tipmu_ref, tipstd_ref, *rest, inv_hw, depth, add_noise):
    if add_noise:
        eps_ref, mu_ref, std_ref, prompt_ref = rest
    else:
        mu_ref, std_ref = rest

    # --- backbone stand-in: global average pool (lane reduce) + Linear C->F --
    # x is streamed in its native dtype; for f32 inputs the astype is a no-op
    # so no full-tile f32 temp is materialised.
    pooled = jnp.sum(x_ref[...].astype(jnp.float32), axis=-1) * inv_hw    # (tb, C)
    fx = jnp.dot(pooled.astype(jnp.bfloat16), wbb_ref[...],
                 preferred_element_type=jnp.float32) + bbb_ref[...]       # (tb, F)
    fx = fx.astype(jnp.bfloat16)

    # --- fc_mu / fc_std with both Linear layers pre-composed (no activation) -
    fx_mu = jnp.dot(fx, wmu_ref[...], preferred_element_type=jnp.float32)   # (tb, LF)
    fx_st = jnp.dot(fx, wstd_ref[...], preferred_element_type=jnp.float32)  # (tb, LF)

    def tile_depth(a):
        # Replicate along the lane axis so the output row layout is
        # [d=0 | d=1 | ...]; lane-aligned vreg copies when L*F % 128 == 0.
        return a if depth == 1 else jnp.concatenate([a] * depth, axis=-1)

    # tip contribution (incl. composed bias and the folded "-5" for std) is a
    # batch-independent pinned (1, depth*LF) row computed once in the wrapper.
    mu = tile_depth(fx_mu) + tipmu_ref[...]                         # (tb, depth*LF)
    std = jax.nn.softplus(tile_depth(fx_st) + tipstd_ref[...])      # (tb, depth*LF)

    mu_ref[...] = mu
    std_ref[...] = std
    if add_noise:
        prompt_ref[...] = mu + std * eps_ref[...]


# ---------------------------------------------------------------------------
# wrapper
# ---------------------------------------------------------------------------
def prompt_encoder_forward(prep, x, tip, perturb_var=0.0, noise_seed=0):
    """Forward of PROMPT_Encoder. `perturb_var` must be a static Python number
    (0 disables the reparameterisation noise entirely)."""
    bs, C, H, W = x.shape
    depth = prep["depth"]
    L = prep["prompt_length"]
    F = prep["prompt_featuers"]
    lf = L * F
    dlf = depth * lf
    add_noise = bool(perturb_var != 0)

    x_flat = x.reshape(bs, C, H * W)                    # free reshape, native dtype

    # tip.detach()[:, 0, :]; its batch-independent contribution to both
    # composed Linears is hoisted out of the grid (tiny (depth, LF) matmuls).
    tip0 = jax.lax.stop_gradient(tip)[:, 0, :].astype(jnp.bfloat16)        # (depth, F)
    tip_mu = (jnp.dot(tip0, prep["wmu_tip"], preferred_element_type=jnp.float32)
              + prep["bc_mu"]).reshape(1, dlf)
    tip_st = (jnp.dot(tip0, prep["wstd_tip"], preferred_element_type=jnp.float32)
              + prep["bc_std"]).reshape(1, dlf)          # -5 already folded into bc_std

    # ---- batch tile / VMEM budget -----------------------------------------
    n_out = 3 if add_noise else 2
    x_row = C * H * W * x.dtype.itemsize
    gap_temp = 0 if x.dtype == jnp.float32 else C * H * W * 4     # f32 upcast temp
    per_row = (2 * x_row + gap_temp                       # double-buffered x stream
               + 2 * n_out * dlf * 4                      # double-buffered f32 outputs
               + (2 * dlf * 4 if add_noise else 0))       # eps stream
    fixed = 2 * (prep["w_bb"].size * 2 + prep["b_bb"].size * 4
                 + prep["wmu_fx"].size * 2 + prep["wstd_fx"].size * 2
                 + 2 * dlf * 4)                           # pinned weights (x2 buffers)
    budget = 40 * 2 ** 20
    tb = _pick_batch_tile(bs, max(1, (budget - fixed) // max(1, per_row)))
    if _is_v7x() and bs >= 2 and bs // tb < 2:
        tb = _pick_batch_tile(bs, bs // 2)                # shard across both TCs
    grid = (bs // tb,)
    vmem_limit = int(min(48 * 2 ** 20,
                         max(32 * 2 ** 20, fixed + tb * per_row + 4 * 2 ** 20)))

    in_specs = [
        pl.BlockSpec((tb, C, H * W), lambda b: (b, 0, 0)),   # x stream
        _pinned((C, F)),                                      # backbone weight
        _pinned((1, F)),                                      # backbone bias
        _pinned((F, lf)),                                     # composed W (mu, fea_x half)
        _pinned((F, lf)),                                     # composed W (std, fea_x half)
        _pinned((1, dlf)),                                    # tip contribution (mu)
        _pinned((1, dlf)),                                    # tip contribution (std, -5 folded)
    ]
    operands = [x_flat, prep["w_bb"], prep["b_bb"],
                prep["wmu_fx"], prep["wstd_fx"], tip_mu, tip_st]
    if add_noise:
        eps = _draw_eps(noise_seed, (bs, dlf), perturb_var)
        in_specs.append(pl.BlockSpec((tb, dlf), lambda b: (b, 0)))
        operands.append(eps)

    row_spec = pl.BlockSpec((tb, dlf), lambda b: (b, 0))
    row_sds = jax.ShapeDtypeStruct((bs, dlf), jnp.float32)
    out_specs = (row_spec, row_spec) + ((row_spec,) if add_noise else ())
    out_shape = (row_sds, row_sds) + ((row_sds,) if add_noise else ())

    kernel = functools.partial(encoder_kernel, inv_hw=1.0 / float(H * W),
                               depth=depth, add_noise=add_noise)
    outs = pl.pallas_call(
        kernel,
        grid=grid,
        in_specs=in_specs,
        out_specs=out_specs,
        out_shape=out_shape,
        compiler_params=pltpu.CompilerParams(
            dimension_semantics=("parallel",),
            vmem_limit_bytes=vmem_limit),
    )(*operands)

    if add_noise:
        mu2, std2, prompt2 = outs
    else:
        mu2, std2 = outs
        prompt2 = mu2                        # prompt == mu when perturb_var == 0

    # all reshapes below are row-major contiguous -> free
    prompt = prompt2.reshape(bs, depth, L, F)
    mu = mu2.reshape(bs * depth, lf)
    std = std2.reshape(bs * depth, lf)
    return prompt, (mu, std)


# ---------------------------------------------------------------------------
# parameters: raw (PyTorch-equivalent) init + kernel-ready (composed/bf16) prep
# ---------------------------------------------------------------------------
def _linear_init(key, fan_in, fan_out):
    kw, kb = jax.random.split(key)
    bound = 1.0 / jnp.sqrt(fan_in)
    w = jax.random.uniform(kw, (fan_in, fan_out), jnp.float32, -bound, bound)
    b = jax.random.uniform(kb, (fan_out,), jnp.float32, -bound, bound)
    return w, b


def init_raw_params(key, C, depth, prompt_length, prompt_featuers, hidden=256):
    ks = jax.random.split(key, 5)
    F = prompt_featuers
    w_bb, b_bb = _linear_init(ks[0], C, F)
    wmu1, bmu1 = _linear_init(ks[1], 2 * F, hidden)
    wmu2, bmu2 = _linear_init(ks[2], hidden, prompt_length * F)
    ws1, bs1 = _linear_init(ks[3], 2 * F, hidden)
    ws2, bs2 = _linear_init(ks[4], hidden, prompt_length * F)
    return dict(depth=depth, prompt_length=prompt_length, prompt_featuers=F,
                w_bb=w_bb, b_bb=b_bb,
                wmu1=wmu1, bmu1=bmu1, wmu2=wmu2, bmu2=bmu2,
                ws1=ws1, bs1=bs1, ws2=ws2, bs2=bs2)


def prepare_params(raw):
    """Pre-compose the two Linear layers of fc_mu / fc_std (valid because the
    PyTorch Sequentials have no activation between them), split by the
    [tip | fea_x] input halves, fold the softplus(x - 5) shift into the std
    bias, and cast matmul operands to bf16 (biases stay f32)."""
    F = raw["prompt_featuers"]
    bf = jnp.bfloat16
    hi = jax.lax.Precision.HIGHEST

    wc_mu = jnp.dot(raw["wmu1"], raw["wmu2"], precision=hi)          # (2F, LF)
    bc_mu = jnp.dot(raw["bmu1"], raw["wmu2"], precision=hi) + raw["bmu2"]
    wc_std = jnp.dot(raw["ws1"], raw["ws2"], precision=hi)           # (2F, LF)
    bc_std = jnp.dot(raw["bs1"], raw["ws2"], precision=hi) + raw["bs2"] - 5.0

    return dict(
        depth=raw["depth"], prompt_length=raw["prompt_length"],
        prompt_featuers=F,
        w_bb=raw["w_bb"].astype(bf), b_bb=raw["b_bb"].reshape(1, -1),
        wmu_tip=wc_mu[:F].astype(bf), wmu_fx=wc_mu[F:].astype(bf),
        wstd_tip=wc_std[:F].astype(bf), wstd_fx=wc_std[F:].astype(bf),
        bc_mu=bc_mu.reshape(1, -1), bc_std=bc_std.reshape(1, -1),
    )


# ---------------------------------------------------------------------------
# pure-JAX reference: original (un-composed) two-layer math of the module
# ---------------------------------------------------------------------------
def reference_mu_std(raw, x, tip):
    bf = jnp.bfloat16
    bs, C, H, W = x.shape
    depth, F = raw["depth"], raw["prompt_featuers"]
    pooled = jnp.sum(x.astype(jnp.float32).reshape(bs, C, -1), axis=-1) * (1.0 / (H * W))
    fea_x = (jnp.dot(pooled.astype(bf), raw["w_bb"].astype(bf),
                     preferred_element_type=jnp.float32) + raw["b_bb"])
    fea_x = fea_x.astype(bf).astype(jnp.float32)      # mirror the kernel's bf16 fea_x
    tip0 = tip[:, 0, :].astype(bf).astype(jnp.float32)
    tip_e = jnp.broadcast_to(tip0[None], (bs, depth, F)).reshape(-1, F)
    fx_e = jnp.broadcast_to(fea_x[:, None, :], (bs, depth, F)).reshape(-1, F)
    fea = jnp.concatenate([tip_e, fx_e], axis=1)

    def seq(w1, b1, w2, b2):
        return (fea @ w1 + b1) @ w2 + b2

    mu = seq(raw["wmu1"], raw["bmu1"], raw["wmu2"], raw["bmu2"])
    std = jax.nn.softplus(seq(raw["ws1"], raw["bs1"], raw["ws2"], raw["bs2"]) - 5.0)
    return mu, std


# ---------------------------------------------------------------------------
if __name__ == "__main__":
    key = jax.random.PRNGKey(0)
    k_x, k_tip, k_par = jax.random.split(key, 3)

    # small shapes consistent with the module's forward
    bs, C, H, W = 2, 4, 16, 16
    depth, prompt_length, prompt_featuers = 3, 4, 32
    n_tip_tokens = 5
    lf = prompt_length * prompt_featuers

    x = jax.random.normal(k_x, (bs, C, H, W), dtype=jnp.float32)
    tip = jax.random.normal(k_tip, (depth, n_tip_tokens, prompt_featuers),
                            dtype=jnp.float32)

    raw = init_raw_params(k_par, C, depth, prompt_length, prompt_featuers)
    prep = prepare_params(raw)

    # deterministic path (perturb_var = 0): no eps, no prompt output in-kernel
    prompt, (mu, std) = prompt_encoder_forward(prep, x, tip, perturb_var=0.0)
    jax.block_until_ready((prompt, mu, std))

    assert prompt.shape == (bs, depth, prompt_length, prompt_featuers)
    assert mu.shape == (bs * depth, lf)
    assert std.shape == (bs * depth, lf)
    assert bool(jnp.all(std >= 0.0))
    assert jnp.allclose(prompt.reshape(mu.shape), mu)

    # numeric check against the original two-layer math
    mu_ref, std_ref = reference_mu_std(raw, x, tip)
    assert jnp.allclose(mu, mu_ref, atol=5e-3, rtol=5e-2), \
        float(jnp.max(jnp.abs(mu - mu_ref)))
    assert jnp.allclose(std, std_ref, atol=5e-3, rtol=5e-2), \
        float(jnp.max(jnp.abs(std - std_ref)))

    # stochastic path (perturb_var != 0): eps streamed in, prompt fused in-kernel
    prompt_n, (mu_n, std_n) = prompt_encoder_forward(
        prep, x, tip, perturb_var=0.1, noise_seed=1234)
    jax.block_until_ready(prompt_n)
    assert prompt_n.shape == prompt.shape
    assert bool(jnp.all(jnp.isfinite(prompt_n)))
    assert not bool(jnp.allclose(prompt_n, prompt))       # noise actually applied
    eps = _draw_eps(1234, (bs, depth * lf), 0.1).reshape(bs * depth, lf)
    assert jnp.allclose(prompt_n.reshape(bs * depth, lf), mu_n + std_n * eps,
                        atol=1e-5, rtol=1e-5)

    print("KERNEL_OK")
</pallas_src>

<mosaic_0001>
module attributes {stable_mosaic.version = 11 : i64} {
  func.func @encoder_kernel(%arg0: i32, %arg1: memref<2x4x256xf32, #tpu.memory_space<vmem>>, %arg2: memref<4x32xbf16, #tpu.memory_space<vmem>>, %arg3: memref<1x32xf32, #tpu.memory_space<vmem>>, %arg4: memref<32x128xbf16, #tpu.memory_space<vmem>>, %arg5: memref<32x128xbf16, #tpu.memory_space<vmem>>, %arg6: memref<1x384xf32, #tpu.memory_space<vmem>>, %arg7: memref<1x384xf32, #tpu.memory_space<vmem>>, %arg8: memref<2x384xf32, #tpu.memory_space<vmem>>, %arg9: memref<2x384xf32, #tpu.memory_space<vmem>>) attributes {dimension_semantics = [#tpu.dimension_semantics<parallel>], iteration_bounds = array<i64: 1>, scalar_prefetch = 0 : i64, scratch_operands = 0 : i64, tpu.core_type = #tpu.core_type<tc>, window_params = [{transform_indices = @transform_0, window_bounds = array<i64: 2, 4, 256>}, {pipeline_mode = #tpu.pipeline_mode<synchronous>, transform_indices = @transform_1, window_bounds = array<i64: 4, 32>}, {pipeline_mode = #tpu.pipeline_mode<synchronous>, transform_indices = @transform_2, window_bounds = array<i64: 1, 32>}, {pipeline_mode = #tpu.pipeline_mode<synchronous>, transform_indices = @transform_3, window_bounds = array<i64: 32, 128>}, {pipeline_mode = #tpu.pipeline_mode<synchronous>, transform_indices = @transform_4, window_bounds = array<i64: 32, 128>}, {pipeline_mode = #tpu.pipeline_mode<synchronous>, transform_indices = @transform_5, window_bounds = array<i64: 1, 384>}, {pipeline_mode = #tpu.pipeline_mode<synchronous>, transform_indices = @transform_6, window_bounds = array<i64: 1, 384>}, {transform_indices = @transform_7, window_bounds = array<i64: 2, 384>}, {transform_indices = @transform_8, window_bounds = array<i64: 2, 384>}]} {
    %c0 = arith.constant 0 : index
    %c0_0 = arith.constant 0 : index
    %c0_1 = arith.constant 0 : index
    %0 = vector.load %arg1[%c0, %c0_0, %c0_1] : memref<2x4x256xf32, #tpu.memory_space<vmem>>, vector<2x4x256xf32>
    %cst = arith.constant dense<0.000000e+00> : vector<2x4xf32>
    %1 = vector.multi_reduction <add>, %0, %cst [2] : vector<2x4x256xf32> to vector<2x4xf32>
    %cst_2 = arith.constant 3.906250e-03 : f32
    %2 = vector.broadcast %cst_2 : f32 to vector<2x4xf32>
    %3 = arith.mulf %1, %2 : vector<2x4xf32>
    %4 = arith.truncf %3 : vector<2x4xf32> to vector<2x4xbf16>
    %c0_3 = arith.constant 0 : index
    %c0_4 = arith.constant 0 : index
    %5 = vector.load %arg2[%c0_3, %c0_4] : memref<4x32xbf16, #tpu.memory_space<vmem>>, vector<4x32xbf16>
    %cst_5 = arith.constant dense<0.000000e+00> : vector<2x32xf32>
    %6 = tpu.matmul %4, %5, %cst_5 {dimension_numbers = #tpu.dot_dimension_numbers<[1], [0], [0], [1], [0, 0, 1, 1], [], []>} : vector<2x4xbf16>, vector<4x32xbf16>, vector<2x32xf32> -> vector<2x32xf32>
    %c0_6 = arith.constant 0 : index
    %c0_7 = arith.constant 0 : index
    %7 = vector.load %arg3[%c0_6, %c0_7] : memref<1x32xf32, #tpu.memory_space<vmem>>, vector<1x32xf32>
    %8 = vector.broadcast %7 : vector<1x32xf32> to vector<2x32xf32>
    %9 = arith.addf %6, %8 : vector<2x32xf32>
    %10 = arith.truncf %9 : vector<2x32xf32> to vector<2x32xbf16>
    %c0_8 = arith.constant 0 : index
    %c0_9 = arith.constant 0 : index
    %11 = vector.load %arg4[%c0_8, %c0_9] : memref<32x128xbf16, #tpu.memory_space<vmem>>, vector<32x128xbf16>
    %cst_10 = arith.constant dense<0.000000e+00> : vector<2x128xf32>
    %12 = tpu.matmul %10, %11, %cst_10 {dimension_numbers = #tpu.dot_dimension_numbers<[1], [0], [0], [1], [0, 0, 1, 1], [], []>} : vector<2x32xbf16>, vector<32x128xbf16>, vector<2x128xf32> -> vector<2x128xf32>
    %c0_11 = arith.constant 0 : index
    %c0_12 = arith.constant 0 : index
    %13 = vector.load %arg5[%c0_11, %c0_12] : memref<32x128xbf16, #tpu.memory_space<vmem>>, vector<32x128xbf16>
    %cst_13 = arith.constant dense<0.000000e+00> : vector<2x128xf32>
    %14 = tpu.matmul %10, %13, %cst_13 {dimension_numbers = #tpu.dot_dimension_numbers<[1], [0], [0], [1], [0, 0, 1, 1], [], []>} : vector<2x32xbf16>, vector<32x128xbf16>, vector<2x128xf32> -> vector<2x128xf32>
    %15 = tpu.concatenate %12, %12, %12 in 1 : vector<2x128xf32>, vector<2x128xf32>, vector<2x128xf32> -> vector<2x384xf32>
    %c0_14 = arith.constant 0 : index
    %c0_15 = arith.constant 0 : index
    %16 = vector.load %arg6[%c0_14, %c0_15] : memref<1x384xf32, #tpu.memory_space<vmem>>, vector<1x384xf32>
    %17 = vector.broadcast %16 : vector<1x384xf32> to vector<2x384xf32>
    %18 = arith.addf %15, %17 : vector<2x384xf32>
    %19 = tpu.concatenate %14, %14, %14 in 1 : vector<2x128xf32>, vector<2x128xf32>, vector<2x128xf32> -> vector<2x384xf32>
    %c0_16 = arith.constant 0 : index
    %c0_17 = arith.constant 0 : index
    %20 = vector.load %arg7[%c0_16, %c0_17] : memref<1x384xf32, #tpu.memory_space<vmem>>, vector<1x384xf32>
    %21 = vector.broadcast %20 : vector<1x384xf32> to vector<2x384xf32>
    %22 = arith.addf %19, %21 : vector<2x384xf32>
    %cst_18 = arith.constant 0.000000e+00 : f32
    %23 = vector.broadcast %cst_18 : f32 to vector<2x384xf32>
    %24 = arith.maximumf %22, %23 : vector<2x384xf32>
    %25 = vector.broadcast %cst_18 : f32 to vector<2x384xf32>
    %26 = arith.subf %22, %25 : vector<2x384xf32>
    %27 = arith.cmpf one, %26, %26 : vector<2x384xf32>
    %28 = vector.broadcast %cst_18 : f32 to vector<2x384xf32>
    %29 = arith.addf %22, %28 : vector<2x384xf32>
    %30 = math.absf %26 : vector<2x384xf32>
    %cst_19 = arith.constant 0.000000e+00 : f32
    %31 = vector.broadcast %cst_19 : f32 to vector<2x384xf32>
    %32 = arith.subf %31, %30 : vector<2x384xf32>
    %33 = math.exp %32 : vector<2x384xf32>
    %34 = math.log1p %33 : vector<2x384xf32>
    %35 = arith.addf %24, %34 : vector<2x384xf32>
    %36 = arith.select %27, %29, %35 : vector<2x384xi1>, vector<2x384xf32>
    %c0_20 = arith.constant 0 : index
    %c0_21 = arith.constant 0 : index
    %37 = vector.load %arg8[%c0_20, %c0_21] : memref<2x384xf32, #tpu.memory_space<vmem>>, vector<2x384xf32>
    tpu.vector_store %arg8[%c0_20, %c0_21], %18 {strides = array<i32>} : memref<2x384xf32, #tpu.memory_space<vmem>>, vector<2x384xf32>,
    %c0_22 = arith.constant 0 : index
    %c0_23 = arith.constant 0 : index
    %38 = vector.load %arg9[%c0_22, %c0_23] : memref<2x384xf32, #tpu.memory_space<vmem>>, vector<2x384xf32>
    tpu.vector_store %arg9[%c0_22, %c0_23], %36 {strides = array<i32>} : memref<2x384xf32, #tpu.memory_space<vmem>>, vector<2x384xf32>,
    return
  }
  func.func @transform_0(%arg0: i32) -> (i32, i32, i32) {
    %c0_i32 = arith.constant 0 : i32
    %c0_i32_0 = arith.constant 0 : i32
    %c0_i32_1 = arith.constant 0 : i32
    return %arg0, %c0_i32, %c0_i32_0 : i32, i32, i32
  }
  func.func @transform_1(%arg0: i32) -> (i32, i32) {
    %c0_i32 = arith.constant 0 : i32
    %c0_i32_0 = arith.constant 0 : i32
    %c0_i32_1 = arith.constant 0 : i32
    return %c0_i32, %c0_i32_0 : i32, i32
  }
  func.func @transform_2(%arg0: i32) -> (i32, i32) {
    %c0_i32 = arith.constant 0 : i32
    %c0_i32_0 = arith.constant 0 : i32
    %c0_i32_1 = arith.constant 0 : i32
    return %c0_i32, %c0_i32_0 : i32, i32
  }
  func.func @transform_3(%arg0: i32) -> (i32, i32) {
    %c0_i32 = arith.constant 0 : i32
    %c0_i32_0 = arith.constant 0 : i32
    %c0_i32_1 = arith.constant 0 : i32
    return %c0_i32, %c0_i32_0 : i32, i32
  }
  func.func @transform_4(%arg0: i32) -> (i32, i32) {
    %c0_i32 = arith.constant 0 : i32
    %c0_i32_0 = arith.constant 0 : i32
    %c0_i32_1 = arith.constant 0 : i32
    return %c0_i32, %c0_i32_0 : i32, i32
  }
  func.func @transform_5(%arg0: i32) -> (i32, i32) {
    %c0_i32 = arith.constant 0 : i32
    %c0_i32_0 = arith.constant 0 : i32
    %c0_i32_1 = arith.constant 0 : i32
    return %c0_i32, %c0_i32_0 : i32, i32
  }
  func.func @transform_6(%arg0: i32) -> (i32, i32) {
    %c0_i32 = arith.constant 0 : i32
    %c0_i32_0 = arith.constant 0 : i32
    %c0_i32_1 = arith.constant 0 : i32
    return %c0_i32, %c0_i32_0 : i32, i32
  }
  func.func @transform_7(%arg0: i32) -> (i32, i32) {
    %c0_i32 = arith.constant 0 : i32
    %c0_i32_0 = arith.constant 0 : i32
    return %arg0, %c0_i32 : i32, i32
  }
  func.func @transform_8(%arg0: i32) -> (i32, i32) {
    %c0_i32 = arith.constant 0 : i32
    %c0_i32_0 = arith.constant 0 : i32
    return %arg0, %c0_i32 : i32, i32
  }
}

</mosaic_0001>

<bundles_post_ra>
// kernel: tpu_custom_call.1
= control target key start
LH: loop header
LB: loop body
LE: loop exit
PB: predicated region body
PF: predicated region fallthrough
CT: control target
= control target key end

     0   :  { %14 = vsyncpa [#allocation3], 0  ;;  %s851_s0 = inlined_call_operand.hbm [shape: f32[2,4,256], index: 0, kind: input, shape index: {}]   ;;  %s852_s1 = inlined_call_operand.hbm [shape: bf16[4,32], index: 1, kind: input, shape index: {}]   ;;  %s853_s2 = inlined_call_operand.vmem [shape: f32[1,32], index: 2, kind: input, shape index: {}]   ;;  %s854_s3 = inlined_call_operand.hbm [shape: bf16[32,128], index: 3, kind: input, shape index: {}]   ;;  %s855_s4 = inlined_call_operand.hbm [shape: bf16[32,128], index: 4, kind: input, shape index: {}]   ;;  %s856_s5 = inlined_call_operand.vmem [shape: f32[1,384], index: 5, kind: input, shape index: {}]   ;;  %s857_s6 = inlined_call_operand.vmem [shape: f32[1,384], index: 6, kind: input, shape index: {}]   ;;  %s858_s7 = inlined_call_operand.hbm [shape: f32[2,384], index: 7, kind: output, shape index: {0}]   ;;  %s859_s8 = inlined_call_operand.hbm [shape: f32[2,384], index: 8, kind: output, shape index: {1}]  }
   0x1   :  { %15 = vsyncpa [#allocation6], 0 }
   0x2   :  { %16 = vsyncpa [#allocation9], 0 }
   0x3   :  { %17 = vsyncpa [#allocation4], 0 }
   0x4   :  { %18 = vsyncpa [#allocation12], 0  ;;  %s675_s27 = smov [#allocation5]   ;;  %s676_s29 = smov [#allocation2]  }
   0x5   :  { %s37_s28 = sshll.u32 %s675_s27, 4  ;;  %s24_s30 = sshll.u32 %s676_s29, 4  ;;  %s38_s28 = int_to_ptr.vmem [resolvable:$true] %s37_s28  ;;  %s733_s30 = int_to_ptr.vmem [resolvable:$true] %s24_s30 }
   0x6   :  { %s533_s11 = scalar_lea.hbm %s852_s1, 32 }
   0x7   :  { %p534_p0 = scmp.ne.s32.totalorder %s852_s1, %s533_s11  ;;  %p537_p1 = scmp.lt.u32.totalorder %s533_s11, %s852_s1 }
   0x9   :  { %p539_p2 = pnand %p537_p1, %p534_p0 }
   0xb   :  { %542 = shalt.err (!%p539_p2)
}
   0xc   :  { %s543_s16 = scalar_lea.vmem %s38_s28, 32  ;;  %p548_p4 = scmp.lt.s32.totalorder %s38_s28, %s38_s28 }
   0xd   :  { %p544_p3 = scmp.ne.s32.totalorder %s38_s28, %s543_s16  ;;  %p549_p5 = scmp.lt.s32.totalorder %s543_s16, %s543_s16 }
   0xf   :  { %p550_p6 = por %p549_p5, %p548_p4 }
  0x11   :  { %p551_p7 = pnand %p550_p6, %p544_p3 }
  0x13   :  { %554 = shalt.err (!%p551_p7)
}
  0x14   :  { %40 = dma.hbm_to_vmem [thread:$0]  %s852_s1, 32, %s38_s28, [#allocation6]  }
  0x15   :  { %s555_s21 = scalar_lea.hbm %s851_s0, 256 }
  0x16   :  { %p556_p8 = scmp.ne.s32.totalorder %s851_s0, %s555_s21  ;;  %p559_p9 = scmp.lt.u32.totalorder %s555_s21, %s851_s0 }
  0x18   :  { %p561_p10 = pnand %p559_p9, %p556_p8 }
  0x1a   :  { %564 = shalt.err (!%p561_p10)
}
  0x1b   :  { %s565_s26 = scalar_lea.vmem %s733_s30, 256  ;;  %p570_p12 = scmp.lt.s32.totalorder %s733_s30, %s733_s30 }
  0x1c   :  { %p566_p11 = scmp.ne.s32.totalorder %s733_s30, %s565_s26  ;;  %p571_p13 = scmp.lt.s32.totalorder %s565_s26, %s565_s26 }
  0x1e   :  { %p572_p0 = por %p571_p13, %p570_p12 }
  0x20   :  { %p573_p1 = pnand %p572_p0, %p566_p11 }
  0x22   :  { %576 = shalt.err (!%p573_p1)
}
  0x23   :  { %s677_s1 = smov 128   ;;  %s678_s27 = smov 8  }
  0x24   :  { %30 = dma.hbm_to_vmem [thread:$0]  %s851_s0, 256, %s733_s30, [#allocation3], %s677_s1, %s677_s1, %s678_s27  }
  0x25   :  { %s679_s9 = smov [#allocation7]   ;;  %s577_s13 = scalar_lea.hbm %s854_s3, 256 }
  0x26   :  { %s48_s10 = sshll.u32 %s679_s9, 4  ;;  %p578_p2 = scmp.ne.s32.totalorder %s854_s3, %s577_s13  ;;  %s49_s10 = int_to_ptr.vmem [resolvable:$true] %s48_s10 }
  0x27   :  { %p581_p3 = scmp.lt.u32.totalorder %s577_s13, %s854_s3 }
  0x29   :  { %p583_p4 = pnand %p581_p3, %p578_p2 }
  0x2b   :  { %586 = shalt.err (!%p583_p4)
}
  0x2c   :  { %s587_s18 = scalar_lea.vmem %s49_s10, 256  ;;  %p592_p6 = scmp.lt.s32.totalorder %s49_s10, %s49_s10 }
  0x2d   :  { %p588_p5 = scmp.ne.s32.totalorder %s49_s10, %s587_s18  ;;  %p593_p7 = scmp.lt.s32.totalorder %s587_s18, %s587_s18 }
  0x2f   :  { %p594_p8 = por %p593_p7, %p592_p6 }
  0x31   :  { %p595_p9 = pnand %p594_p8, %p588_p5 }
  0x33   :  { %598 = shalt.err (!%p595_p9)
}
  0x34   :  { %s680_s0 = smov 64   ;;  %s681_s30 = smov 4  }
  0x35   :  { %54 = dma.hbm_to_vmem [thread:$0]  %s854_s3, 256, %s49_s10, [#allocation6], %s680_s0, %s680_s0, %s681_s30  }
  0x36   :  { %s682_s21 = smov [#allocation8]   ;;  %s599_s25 = scalar_lea.hbm %s855_s4, 256 }
  0x37   :  { %s60_s22 = sshll.u32 %s682_s21, 4  ;;  %p600_p10 = scmp.ne.s32.totalorder %s855_s4, %s599_s25  ;;  %s61_s22 = int_to_ptr.vmem [resolvable:$true] %s60_s22 }
  0x38   :  { %p603_p11 = scmp.lt.u32.totalorder %s599_s25, %s855_s4 }
  0x3a   :  { %p605_p12 = pnand %p603_p11, %p600_p10 }
  0x3c   :  { %608 = shalt.err (!%p605_p12)
}
  0x3d   :  { %s609_s29 = scalar_lea.vmem %s61_s22, 256  ;;  %p614_p0 = scmp.lt.s32.totalorder %s61_s22, %s61_s22 }
  0x3e   :  { %p610_p13 = scmp.ne.s32.totalorder %s61_s22, %s609_s29  ;;  %p615_p1 = scmp.lt.s32.totalorder %s609_s29, %s609_s29 }
  0x40   :  { %p616_p2 = por %p615_p1, %p614_p0 }
  0x42   :  { %p617_p3 = pnand %p616_p2, %p610_p13 }
  0x44   :  { %620 = shalt.err (!%p617_p3)
}
  0x45   :  { %66 = dma.hbm_to_vmem [thread:$0]  %s855_s4, 256, %s61_s22, [#allocation9], %s680_s0, %s680_s0, %s681_s30  }
  0x46   :  { %665 = dma.done.wait [#allocation3], 256  }
  0x47   :  { %666 = vsyncadd [#allocation3], 4294967040 }
  0x48   :  { %667 = dma.done.wait [#allocation6], 288  }
  0x49   :  { %668 = vsyncadd [#allocation6], 4294967008 }
  0x4a   :  { %669 = dma.done.wait [#allocation9], 256  }
  0x4b   :  { %670 = vsyncadd [#allocation9], 4294967040  ;;  %vm92_vm0 = vcmask 1043456   ;;  %v84_v0 = vld [vmem:[#allocation2] sm:$0xff]  ;;  %v85_v1 = vld [vmem:[#allocation2 + $0x8] sm:$0xff]  ;;  %vm136_vm1 = vcmask 1041408   ;;  %v119_v14 = vlaneseq }
  0x4c   :  { %v88_v2 = vcombine.high %v84_v0, %v84_v0  ;;  %v93_v3 = vsel %vm92_vm0, %v84_v0, 0.0  ;;  %v89_v4 = vcombine.high %v85_v1, %v85_v1  ;;  %v98_v5 = vsel %vm92_vm0, %v85_v1, 0.0  ;;  %v107_v10 = vld [vmem:[#allocation5] sm:$0x3]  ;;  %v518_v13 = vld [vmem:[#allocation7] sm:$0xff]   ;;  %v517_v29 = vld [vmem:[#allocation8] sm:$0xff]  }
  0x4d   :  { %v683_v11 = vmov 0.0   ;;  %v138_v12 = vsel %vm136_vm1, %v107_v10, 0  ;;  %vm684_vm2 = vmmov 0   ;;  %v120_v17 = vand.u32 127, %v119_v14  ;;  %v519_v31 = vld [vmem:[#allocation8 + $0x8] sm:$0xff]   ;;  %v520_v32 = vld [vmem:[#allocation7 + $0x8] sm:$0xff]  }
  0x4e   :  { %v94_v6 = vsel %vm92_vm0, %v88_v2, 0.0  ;;  %v99_v7 = vsel %vm92_vm0, %v89_v4, 0.0  ;;  %480 = vmatprep.subr.bf16.mxu0 %v683_v11  ;;  %486 = vmatprep.subr.bf16.mxu1 %v683_v11  ;;  %v122_v18 = vshrl.u32 %v119_v14, 7  ;;  %vm129_vm3 = vcmask 1041409   ;;  %v464_v33 = vld [vmem:[%s853_s2] ss:$0 sm:$0xff] }
  0x4f   :  { %v95_v8 = vadd.f32 %v94_v6, %v93_v3  ;;  %v100_v9 = vadd.f32 %v99_v7, %v98_v5  ;;  %481 = vmatpush3.bf16.msra.mxu0 %v138_v12  ;;  %482 = vmatprep.mubr.msk.bf16.mxu0 %vm684_vm2, %v683_v11  ;;  %vm132_vm4 = vcmask 31744   ;;  %vm197_vm5 = vcmask 261120   ;;  %v297_v45 = vld [vmem:[%s856_s5] sm:$0x7]  ;;  %s686_s5 = smov [#allocation10]  }
  0x50   :  { %494 = vmatprep.subr.bf16.mxu0 %v683_v11  ;;  %490 = vmatprep.mubr.msk.bf16.mxu1 %vm684_vm2, %v683_v11  ;;  %v123_v22 = vsub.s32 %v120_v17, %v122_v18  ;;  %v685_v40 = vmov 1983009808   ;;  %v301_v42 = vsub.s32 0, %v122_v18  ;;  %v305_v43 = vsub.s32 1, %v122_v18  ;;  %v317_v46 = vld [vmem:[%s857_s6] sm:$0x7] }
  0x51   :  { %96 = vadd.xlane.f32.xlu0 %v95_v8  ;;  %487 = vmatpush3.bf16.msra.mxu1 %v518_v13  ;;  %v396_v41 = vunpack.c.l.s4 %v685_v40  ;;  %v309_v44 = vsub.s32 2, %v122_v18  ;;  %s439_s6 = sshll.u32 %s686_s5, 4  ;;  %s440_s6 = int_to_ptr.vmem [resolvable:$true] %s439_s6 }
  0x52   :  { %488 = vmatprep.subr.bf16.mxu1 %v683_v11  ;;  %v302_v48 = vrot.slane %v297_v45, %v301_v42  ;;  %v306_v49 = vrot.slane %v297_v45, %v305_v43  ;;  %v322_v51 = vrot.slane %v317_v46, %v301_v42  ;;  %v326_v52 = vrot.slane %v317_v46, %v305_v43  ;;  %s621_s14 = scalar_lea.vmem %s440_s6, 96  ;;  %p626_p5 = scmp.lt.s32.totalorder %s440_s6, %s440_s6 }
  0x53   :  { %v397_v47 = vunpack.c.0.s8 %v396_v41  ;;  %v310_v50 = vrot.slane %v297_v45, %v309_v44  ;;  %v330_v53 = vrot.slane %v317_v46, %v309_v44  ;;  %p622_p4 = scmp.ne.s32.totalorder %s440_s6, %s621_s14  ;;  %p627_p6 = scmp.lt.s32.totalorder %s621_s14, %s621_s14 }
  0x55   :  { %101 = vadd.xlane.f32.xlu0 %v100_v9  ;;  %489 = vmatpush3.bf16.msra.mxu1 %v520_v32  ;;  %v800_v55 = vsub.s32 %v397_v47, %v122_v18  ;;  %p628_p7 = por %p627_p6, %p626_p5 }
  0x57   :  { %p629_p8 = pnand %p628_p7, %p622_p4 }
  0xde   :  { %v97_v15 = vpop.xlane.xlu0 %96 }
  0xdf   :  { %v103_v16 = vmul.f32 0.00390625, %v97_v15 }
  0xe1   :  { %v105_v19 = vpack.c.bf16 %v103_v16, %v103_v16 }
  0xe2   :  { %v102_v20 = vpop.xlane.xlu0 %101 }
  0xe3   :  { %v104_v21 = vmul.f32 0.00390625, %v102_v20  ;;  %v117_v23 = vunpack.c.l.b16 %v105_v19 }
  0xe5   :  { %v106_v24 = vpack.c.bf16 %v104_v21, %v104_v21  ;;  %v124_v26 = vrot.slane %v117_v23, %v123_v22 }
  0xe7   :  { %v118_v25 = vunpack.c.l.b16 %v106_v24 }
  0xe9   :  { %v128_v27 = vrot.slane %v118_v25, %v123_v22 }
  0xeb   :  { %v130_v28 = vsel %vm129_vm3, %v128_v27, %v124_v26 }
  0xec   :  { %v131_v30 = vpack.c.b16 %v130_v28, %v130_v28 }
  0xee   :  { %483 = vmatmul.mubr.msk.bf16.vlgmr.msra.gmra.mrb[0].mxu0 %vm132_vm4, %v131_v30 }
  0xef   :  { %495 = vmatpush3.bf16.msra.mxu0 %v517_v29  ;;  %498 = vmatprep.mubr.msk.bf16.mxu0 %vm684_vm2, %v683_v11 }
  0xf0   :  { %496 = vmatprep.subr.bf16.mxu0 %v683_v11 }
  0xf3   :  { %497 = vmatpush3.bf16.msra.mxu0 %v519_v31 }
 0x1c1   :  { %v174_v34 = vpop.f32.mrb[0].mxu0 }
 0x1c2   :  { %v175_v35 = vadd.f32 %v464_v33, %v174_v34  ;;  %v484_v36 = vpop.f32.mrb[1].mxu0 }
 0x1c3   :  { %v177_v37 = vpop.f32.mrb[2].mxu0 }
 0x1c4   :  { %v180_v38 = vpack.c.bf16 %v175_v35, %v175_v35  ;;  %v485_v39 = vpop.f32.mrb[3].mxu0 }
 0x1c6   :  { %491 = vmatmul.mubr.msk.bf16.vlgmr.msra.gmra.mrb[0].mxu1 %vm197_vm5, %v180_v38  ;;  %499 = vmatmul.mubr.msk.bf16.vlgmr.msra.gmra.mrb[4].mxu0 %vm197_vm5, %v180_v38 }
 0x299   :  { %v235_v54 = vpop.f32.mrb[0].mxu1  ;;  %v291_v56 = vpop.f32.mrb[4].mxu0 }
 0x29a   :  { %v314_v57 = vadd.f32 %v302_v48, %v235_v54  ;;  %v315_v58 = vadd.f32 %v306_v49, %v235_v54  ;;  %v316_v59 = vadd.f32 %v310_v50, %v235_v54  ;;  %v802_v60 = vadd.f32 %v322_v51, %v291_v56  ;;  %v492_v61 = vpop.f32.mrb[1].mxu1  ;;  %v500_v62 = vpop.f32.mrb[5].mxu0 }
 0x29b   :  { %v804_v63 = vadd.f32 %v326_v52, %v291_v56  ;;  %v806_v0 = vadd.f32 %v330_v53, %v291_v56  ;;  %v238_v1 = vpop.f32.mrb[2].mxu1  ;;  %v294_v2 = vpop.f32.mrb[6].mxu0 }
 0x29c   :  { %v394_v3 = vcombine.low %v314_v57, %v315_v58  ;;  %v346_v4 = vand.u32 2147483647, %v802_v60  ;;  %v493_v5 = vpop.f32.mrb[3].mxu1  ;;  %v501_v6 = vpop.f32.mrb[7].mxu0  ;;  %v408_v9 = vrot.slane %v316_v59, %v800_v55 }
 0x29d   :  { %v347_v7 = vand.u32 2147483647, %v804_v63  ;;  %v348_v8 = vand.u32 2147483647, %v806_v0 }
 0x29e   :  { %v349_v10 = vsub.f32 0.0, %v346_v4  ;;  %v401_v11 = vrot.slane %v394_v3, %v800_v55 }
 0x29f   :  { %v350_v12 = vsub.f32 0.0, %v347_v7  ;;  %v351_v13 = vsub.f32 0.0, %v348_v8 }
 0x2a0   :  { %v352_v14 = vmul.f32 1.442695, %v349_v10  ;;  %v409_v15 = vcombine.low %v401_v11, %v408_v9 }
 0x2a1   :  { %v354_v16 = vmul.f32 1.442695, %v350_v12  ;;  %v356_v17 = vmul.f32 1.442695, %v351_v13 }
 0x2a2   :  { %521 = vpow2.f32 %v352_v14  ;;  %411 = vst [vmem:[#allocation10] sm:$0x3f] %v409_v15 }
 0x2a3   :  { %523 = vpow2.f32 %v354_v16 }
 0x2a4   :  { %632 = shalt.err (!%p629_p8)
}
 0x2a5   :  { %s633_s17 = scalar_lea.hbm %s858_s7, 96 }
 0x2a6   :  { %p634_p9 = scmp.ne.s32.totalorder %s858_s7, %s633_s17  ;;  %p637_p10 = scmp.lt.u32.totalorder %s633_s17, %s858_s7 }
 0x2a8   :  { %p639_p11 = pnand %p637_p10, %p634_p9 }
 0x2aa   :  { %642 = shalt.err (!%p639_p11)
}
 0x2ab   :  { %442 = dma.vmem_to_hbm [thread:$0]  %s440_s6, 96, %s858_s7, [#allocation4]   ;;  %525 = vpow2.f32 %v356_v17  ;;  %v337_v35 = vmax.f32 %v802_v60, 0.0  ;;  %v338_v39 = vmax.f32 %v804_v63, 0.0  ;;  %v339_v45 = vmax.f32 %v806_v0, 0.0 }
 0x2ac   :  { %v522_v18 = vpop.eup %521  ;;  %vm340_vm9 = vcmp.ne.f32.partialorder %v802_v60, %v802_v60  ;;  %vm341_vm10 = vcmp.ne.f32.partialorder %v804_v63, %v804_v63  ;;  %vm342_vm11 = vcmp.ne.f32.partialorder %v806_v0, %v806_v0  ;;  %s687_s7 = smov [#allocation11]  }
 0x2ad   :  { %v524_v19 = vpop.eup %523  ;;  %v358_v20 = vadd.f32 1.0, %v522_v18  ;;  %v361_v24 = vmul.f32 -0.5, %v522_v18  ;;  %v364_v28 = vand.u32 2147483647, %v522_v18  ;;  %s449_s22 = sshll.u32 %s687_s7, 4  ;;  %s450_s22 = int_to_ptr.vmem [resolvable:$true] %s449_s22 }
 0x2ae   :  { %v367_v22 = vadd.f32 1.0, %v524_v19  ;;  %v370_v25 = vmul.f32 -0.5, %v524_v19  ;;  %v373_v30 = vand.u32 2147483647, %v524_v19  ;;  %s643_s23 = scalar_lea.vmem %s450_s22, 96  ;;  %p648_p13 = scmp.lt.s32.totalorder %s450_s22, %s450_s22 }
 0x2af   :  { %527 = vlog2.f32 %v358_v20  ;;  %v362_v27 = vadd.f32 1.0, %v361_v24  ;;  %vm365_vm6 = vcmp.lt.f32.partialorder %v364_v28, 0.0004427343  ;;  %p644_p12 = scmp.ne.s32.totalorder %s450_s22, %s643_s23  ;;  %p649_p0 = scmp.lt.s32.totalorder %s643_s23, %s643_s23 }
 0x2b0   :  { %529 = vlog2.f32 %v367_v22  ;;  %v371_v29 = vadd.f32 1.0, %v370_v25  ;;  %vm374_vm7 = vcmp.lt.f32.partialorder %v373_v30, 0.0004427343 }
 0x2b1   :  { %v363_v37 = vmul.f32 %v522_v18, %v362_v27  ;;  %p650_p1 = por %p649_p0, %p648_p13 }
 0x2b2   :  { %v372_v41 = vmul.f32 %v524_v19, %v371_v29 }
 0x2b3   :  { %p651_p2 = pnand %p650_p1, %p644_p12 }
 0x2b5   :  { %v526_v21 = vpop.eup %525 }
 0x2b6   :  { %v376_v23 = vadd.f32 1.0, %v526_v21  ;;  %v379_v26 = vmul.f32 -0.5, %v526_v21  ;;  %v382_v33 = vand.u32 2147483647, %v526_v21 }
 0x2b8   :  { %531 = vlog2.f32 %v376_v23  ;;  %v380_v31 = vadd.f32 1.0, %v379_v26  ;;  %vm383_vm8 = vcmp.lt.f32.partialorder %v382_v33, 0.0004427343 }
 0x2b9   :  { %v528_v32 = vpop.eup %527 }
 0x2ba   :  { %v530_v34 = vpop.eup %529  ;;  %v360_v36 = vmul.f32 0.6931472, %v528_v32  ;;  %v381_v44 = vmul.f32 %v526_v21, %v380_v31 }
 0x2bb   :  { %v369_v40 = vmul.f32 0.6931472, %v530_v34 }
 0x2bc   :  { %v366_v42 = vsel %vm365_vm6, %v363_v37, %v360_v36 }
 0x2bd   :  { %v375_v46 = vsel %vm374_vm7, %v372_v41, %v369_v40  ;;  %v385_v47 = vadd.f32 %v366_v42, %v337_v35 }
 0x2be   :  { %v386_v49 = vadd.f32 %v375_v46, %v338_v39 }
 0x2bf   :  { %v388_v51 = vsel %vm340_vm9, %v802_v60, %v385_v47 }
 0x2c0   :  { %v389_v52 = vsel %vm341_vm10, %v804_v63, %v386_v49 }
 0x2c1   :  { %v415_v54 = vcombine.low %v388_v51, %v389_v52 }
 0x2c2   :  { %v532_v38 = vpop.eup %531 }
 0x2c3   :  { %v378_v43 = vmul.f32 0.6931472, %v532_v38  ;;  %v422_v56 = vrot.slane %v415_v54, %v800_v55 }
 0x2c5   :  { %v384_v48 = vsel %vm383_vm8, %v381_v44, %v378_v43 }
 0x2c6   :  { %v387_v50 = vadd.f32 %v384_v48, %v339_v45 }
 0x2c8   :  { %v390_v53 = vsel %vm342_vm11, %v806_v0, %v387_v50 }
 0x2c9   :  { %v429_v57 = vrot.slane %v390_v53, %v800_v55 }
 0x2cb   :  { %v430_v58 = vcombine.low %v422_v56, %v429_v57 }
 0x2cd   :  { %432 = vst [vmem:[#allocation11] sm:$0x3f] %v430_v58 }
 0x2ce   :  { %654 = shalt.err (!%p651_p2)
}
 0x2cf   :  { %s655_s26 = scalar_lea.hbm %s859_s8, 96 }
 0x2d0   :  { %p656_p3 = scmp.ne.s32.totalorder %s859_s8, %s655_s26  ;;  %p659_p4 = scmp.lt.u32.totalorder %s655_s26, %s859_s8 }
 0x2d2   :  { %p661_p5 = pnand %p659_p4, %p656_p3 }
 0x2d4   :  { %664 = shalt.err (!%p661_p5)
}
 0x2d5   :  { %452 = dma.vmem_to_hbm [thread:$0]  %s450_s22, 96, %s859_s8, [#allocation12]  }
 0x2d6   :  { %671 = dma.done.wait [#allocation4], 96  }
 0x2d7   :  { %672 = vsyncadd [#allocation4], 4294967200 }
 0x2d8   :  { %673 = dma.done.wait [#allocation12], 96  }
 0x2d9   :  { %674 = vsyncadd [#allocation12], 4294967200 }
 0x2da   :  { %459 = vsyncpa [#allocation3], 1 }
 0x2db   :  { %460 = vsyncpa [#allocation6], 1 }
 0x2dc   :  { %461 = vsyncpa [#allocation9], 1 }
 0x2dd   :  { %462 = vsyncpa [#allocation4], 1 }
 0x2de   :  { %463 = vsyncpa [#allocation12], 1 }

</bundles_post_ra>
